<compile_context>
chip_gen: v5e
topology: v5e:2x2
jax: 0.10.0
libtpu: 0.0.40
codegen_flags: <defaults>
</compile_context>

<pallas_src>
import functools

import jax
import jax.numpy as jnp
from jax.experimental import pallas as pl
from jax.experimental.pallas import tpu as pltpu

LANES = 128
TARGET_BLOCK_BYTES = 2 * 1024 * 1024   # per input per grid step


def _soft_l1_kernel(pred_ref, target_ref, out_ref, *, eps):
    """Accumulate sum(sqrt(eps^2 + (pred - target)^2)) of this tile into out_ref.

    out_ref is an (8, 128) f32 block revisited on every grid step, so it acts
    as a vreg-shaped VMEM-resident accumulator: per tile only cheap VPU adds;
    the expensive cross-lane reduction is deferred to the wrapper.
    """
    @pl.when(pl.program_id(0) == 0)
    def _():
        out_ref[...] = jnp.zeros_like(out_ref)

    # Subtract in the native (possibly packed) dtype, upcast the diff once.
    diff = (pred_ref[...] - target_ref[...]).astype(jnp.float32)
    val = jnp.sqrt(jnp.float32(eps * eps) + diff * diff)

    # (tile_rows, 128) -> (tile_rows//8, 8, 128): regroups whole (8,128) vreg
    # tiles (layout preserving); the axis-0 sum is plain VPU vreg adds.
    out_ref[...] += val.reshape(-1, 8, LANES).sum(axis=0)


def _soft_l1_sum_ref(pred, target, eps):
    """Plain-JAX partial sum (used only for the small ragged tail)."""
    diff = (pred - target).astype(jnp.float32)
    return jnp.sum(jnp.sqrt(jnp.float32(eps * eps) + diff * diff))


def soft_l1_loss(pred, target, eps=0.001):
    assert pred.shape == target.shape, "pred/target must have the same shape"
    n = int(pred.size)
    assert n > 0, "empty input"
    eps = float(eps)

    pred_flat = jnp.ravel(pred)
    target_flat = jnp.ravel(target)

    itemsize = int(jnp.dtype(pred.dtype).itemsize)
    # Sublane alignment for the block's second-to-last dim:
    # f32 -> 8, bf16 -> 16, int8/fp8 -> 32.
    sublane_align = max(8, 32 // max(itemsize, 1))
    # Rows per grid step from a byte budget, so bytes/step is dtype-invariant.
    budget_rows = max(TARGET_BLOCK_BYTES // (LANES * itemsize), sublane_align)
    budget_rows = (budget_rows // sublane_align) * sublane_align

    rows = n // LANES                    # whole 128-lane rows
    rem_lanes = n - rows * LANES         # ragged lane elements (< 128)

    if rows >= sublane_align:
        # Balance the tiles: keep each block near the byte budget while making
        # the un-tiled leftover (< num_tiles * sublane_align rows) negligible.
        target_tiles = -(-rows // budget_rows)            # cdiv
        tile_rows = (rows // target_tiles // sublane_align) * sublane_align
        num_tiles = rows // tile_rows
    else:
        tile_rows = 0                    # too small to be worth a kernel launch
        num_tiles = 0

    body_rows = num_tiles * tile_rows
    body_elems = body_rows * LANES

    total = jnp.float32(0.0)

    if num_tiles > 0:
        if rem_lanes == 0:
            # Free reshape: zero-copy, zero padding.
            pred2d = pred_flat.reshape(rows, LANES)
            target2d = target_flat.reshape(rows, LANES)
        else:
            # Rare ragged-lane case: one prefix-slice copy of the lane-aligned
            # prefix.  TODO(synk): avoid via 1-D blocks + in-kernel index mask.
            pred2d = pred_flat[: rows * LANES].reshape(rows, LANES)
            target2d = target_flat[: rows * LANES].reshape(rows, LANES)

        kernel = functools.partial(_soft_l1_kernel, eps=eps)
        acc = pl.pallas_call(
            kernel,
            out_shape=jax.ShapeDtypeStruct((8, LANES), jnp.float32),
            grid_spec=pltpu.PrefetchScalarGridSpec(
                num_scalar_prefetch=0,
                grid=(num_tiles,),
                in_specs=[
                    pl.BlockSpec((tile_rows, LANES), lambda i: (i, 0)),
                    pl.BlockSpec((tile_rows, LANES), lambda i: (i, 0)),
                ],
                # Same output block every step -> VMEM-resident accumulator,
                # written back once (lane-dense, unmasked vst) at the end.
                out_specs=pl.BlockSpec((8, LANES), lambda i: (0, 0)),
            ),
            compiler_params=pltpu.CompilerParams(
                dimension_semantics=("arbitrary",),
                vmem_limit_bytes=32 * 1024 * 1024,
            ),
            cost_estimate=pl.CostEstimate(
                flops=5 * body_elems,
                transcendentals=body_elems,
                bytes_accessed=2 * body_elems * itemsize + 8 * LANES * 4,
            ),
        )(pred2d, target2d)
        total = total + jnp.sum(acc)

    # Ragged tail (leftover rows + <128 ragged lane elements): plain JAX.
    # Negligible HBM traffic and it keeps the kernel's hot loop mask-free.
    if body_elems < n:
        total = total + _soft_l1_sum_ref(
            pred_flat[body_elems:], target_flat[body_elems:], eps)

    return total / jnp.float32(n)


def _reference(pred, target, eps):
    return jnp.mean(jnp.sqrt(jnp.float32(eps) ** 2 + (pred - target) ** 2))


if __name__ == "__main__":
    key = jax.random.PRNGKey(0)
    eps = 0.001

    # Primary small case consistent with typical usage (dense prediction maps).
    k1, k2, k3, k4, k5, k6 = jax.random.split(key, 6)
    shape = (2, 4, 16, 16)
    pred = jax.random.normal(k1, shape, dtype=jnp.float32)
    target = jax.random.normal(k2, shape, dtype=jnp.float32)

    loss_fn = jax.jit(functools.partial(soft_l1_loss, eps=eps))
    loss = jax.block_until_ready(loss_fn(pred, target))
    ref = _reference(pred, target, eps)
    assert jnp.allclose(loss, ref, rtol=2e-5, atol=1e-6), (loss, ref)

    # Ragged case (n % 128 != 0): exercises body kernel + JAX tail path.
    shape2 = (3, 5, 77)
    pred2 = jax.random.normal(k3, shape2, dtype=jnp.float32)
    target2 = jax.random.normal(k4, shape2, dtype=jnp.float32)
    loss2 = jax.block_until_ready(soft_l1_loss(pred2, target2, eps))
    ref2 = _reference(pred2, target2, eps)
    assert jnp.allclose(loss2, ref2, rtol=2e-5, atol=1e-6), (loss2, ref2)

    # Multi-tile case: exercises accumulation across grid steps.
    shape3 = (16, 256, 256)
    pred3 = jax.random.normal(k5, shape3, dtype=jnp.float32)
    target3 = jax.random.normal(k6, shape3, dtype=jnp.float32)
    loss3 = jax.block_until_ready(soft_l1_loss(pred3, target3, eps))
    ref3 = _reference(pred3, target3, eps)
    assert jnp.allclose(loss3, ref3, rtol=2e-5, atol=1e-6), (loss3, ref3)

    print("KERNEL_OK")
</pallas_src>

<mosaic_0001>
module attributes {stable_mosaic.version = 11 : i64} {
  func.func @_soft_l1_kernel(%arg0: i32, %arg1: memref<16x128xf32, #tpu.memory_space<vmem>>, %arg2: memref<16x128xf32, #tpu.memory_space<vmem>>, %arg3: memref<8x128xf32, #tpu.memory_space<vmem>>) attributes {dimension_semantics = [#tpu.dimension_semantics<arbitrary>], iteration_bounds = array<i64: 1>, scalar_prefetch = 0 : i64, scratch_operands = 0 : i64, tpu.core_type = #tpu.core_type<tc>, window_params = [{transform_indices = @transform_0, window_bounds = array<i64: 16, 128>}, {transform_indices = @transform_1, window_bounds = array<i64: 16, 128>}, {pipeline_mode = #tpu.pipeline_mode<synchronous>, transform_indices = @transform_2, window_bounds = array<i64: 8, 128>}]} {
    %c0_i32 = arith.constant 0 : i32
    %0 = arith.cmpi eq, %arg0, %c0_i32 : i32
    %1 = arith.extui %0 : i1 to i32
    %c0_i32_0 = arith.constant 0 : i32
    %2 = arith.cmpi ne, %1, %c0_i32_0 : i32
    scf.if %2 {
      %cst_9 = arith.constant 0.000000e+00 : f32
      %15 = vector.broadcast %cst_9 : f32 to vector<8x128xf32>
      %c0_10 = arith.constant 0 : index
      %c0_11 = arith.constant 0 : index
      %16 = vector.load %arg3[%c0_10, %c0_11] : memref<8x128xf32, #tpu.memory_space<vmem>>, vector<8x128xf32>
      tpu.vector_store %arg3[%c0_10, %c0_11], %15 {strides = array<i32>} : memref<8x128xf32, #tpu.memory_space<vmem>>, vector<8x128xf32>,
    } else {
    }
    %c0 = arith.constant 0 : index
    %c0_1 = arith.constant 0 : index
    %3 = vector.load %arg1[%c0, %c0_1] : memref<16x128xf32, #tpu.memory_space<vmem>>, vector<16x128xf32>
    %c0_2 = arith.constant 0 : index
    %c0_3 = arith.constant 0 : index
    %4 = vector.load %arg2[%c0_2, %c0_3] : memref<16x128xf32, #tpu.memory_space<vmem>>, vector<16x128xf32>
    %5 = arith.subf %3, %4 : vector<16x128xf32>
    %6 = arith.mulf %5, %5 : vector<16x128xf32>
    %cst = arith.constant 9.99999997E-7 : f32
    %7 = vector.broadcast %cst : f32 to vector<16x128xf32>
    %8 = arith.addf %7, %6 : vector<16x128xf32>
    %9 = math.sqrt %8 : vector<16x128xf32>
    %c0_4 = arith.constant 0 : index
    %c0_5 = arith.constant 0 : index
    %10 = vector.load %arg3[%c0_4, %c0_5] : memref<8x128xf32, #tpu.memory_space<vmem>>, vector<8x128xf32>
    %11 = vector.shape_cast %9 : vector<16x128xf32> to vector<2x8x128xf32>
    %cst_6 = arith.constant dense<0.000000e+00> : vector<8x128xf32>
    %12 = vector.multi_reduction <add>, %11, %cst_6 [0] : vector<2x8x128xf32> to vector<8x128xf32>
    %13 = arith.addf %10, %12 : vector<8x128xf32>
    %c0_7 = arith.constant 0 : index
    %c0_8 = arith.constant 0 : index
    %14 = vector.load %arg3[%c0_7, %c0_8] : memref<8x128xf32, #tpu.memory_space<vmem>>, vector<8x128xf32>
    tpu.vector_store %arg3[%c0_7, %c0_8], %13 {strides = array<i32>} : memref<8x128xf32, #tpu.memory_space<vmem>>, vector<8x128xf32>,
    return
  }
  func.func @transform_0(%arg0: i32) -> (i32, i32) {
    %c0_i32 = arith.constant 0 : i32
    %c0_i32_0 = arith.constant 0 : i32
    return %arg0, %c0_i32 : i32, i32
  }
  func.func @transform_1(%arg0: i32) -> (i32, i32) {
    %c0_i32 = arith.constant 0 : i32
    %c0_i32_0 = arith.constant 0 : i32
    return %arg0, %c0_i32 : i32, i32
  }
  func.func @transform_2(%arg0: i32) -> (i32, i32) {
    %c0_i32 = arith.constant 0 : i32
    %c0_i32_0 = arith.constant 0 : i32
    %c0_i32_1 = arith.constant 0 : i32
    return %c0_i32, %c0_i32_0 : i32, i32
  }
}

</mosaic_0001>

<bundles_post_ra>
// kernel: soft_l1_loss.1
= control target key start
LH: loop header
LB: loop body
LE: loop exit
PB: predicated region body
PF: predicated region fallthrough
CT: control target
= control target key end

     0   :  { %s93_s0 = inlined_call_operand.vmem [shape: f32[16,128], index: 0, kind: input, shape index: {}]   ;;  %s94_s1 = inlined_call_operand.vmem [shape: f32[16,128], index: 1, kind: input, shape index: {}]   ;;  %s95_s2 = inlined_call_operand.vmem [shape: f32[8,128], index: 2, kind: output, shape index: {}]  }
   0x1   :  { %v16_v0 = vld [vmem:[%s93_s0] sm:$0xff]  ;;  %v17_v1 = vld [vmem:[%s93_s0 + $0x8] sm:$0xff] }
   0x2   :  { %v18_v2 = vld [vmem:[%s94_s1] sm:$0xff]  ;;  %v19_v3 = vld [vmem:[%s94_s1 + $0x8] sm:$0xff] }
   0x3   :  { %v20_v4 = vsub.f32 %v16_v0, %v18_v2  ;;  %v21_v5 = vsub.f32 %v17_v1, %v19_v3 }
   0x5   :  { %v22_v6 = vmul.f32 %v20_v4, %v20_v4  ;;  %v23_v7 = vmul.f32 %v21_v5, %v21_v5 }
   0x7   :  { %v24_v8 = vadd.f32 1e-06, %v22_v6  ;;  %v25_v9 = vadd.f32 1e-06, %v23_v7 }
   0x9   :  { %59 = vrsqrt.f32 %v24_v8  ;;  %vm33_vm0 = vcmp.eq.f32.partialorder %v24_v8, inf  ;;  %v36_v21 = vand.u32 2147483648, %v24_v8  ;;  %vm35_vm1 = vcmp.eq.f32.partialorder %v24_v8, 0.0 }
   0xa   :  { %61 = vrsqrt.f32 %v25_v9  ;;  %vm45_vm2 = vcmp.eq.f32.partialorder %v25_v9, inf  ;;  %v48_v24 = vand.u32 2147483648, %v25_v9  ;;  %vm47_vm3 = vcmp.eq.f32.partialorder %v25_v9, 0.0 }
   0xf   :  { %v60_v10 = vpop.eup %59 }
  0x10   :  { %v62_v11 = vpop.eup %61  ;;  %v27_v12 = vmul.f32 %v60_v10, %v24_v8 }
  0x11   :  { %v39_v13 = vmul.f32 %v62_v11, %v25_v9 }
  0x12   :  { %v28_v14 = vmul.f32 %v60_v10, %v27_v12 }
  0x13   :  { %v40_v15 = vmul.f32 %v62_v11, %v39_v13 }
  0x14   :  { %v29_v16 = vmul.f32 0.5, %v28_v14 }
  0x15   :  { %v41_v17 = vmul.f32 0.5, %v40_v15 }
  0x16   :  { %v30_v18 = vsub.f32 1.5, %v29_v16 }
  0x17   :  { %v42_v19 = vsub.f32 1.5, %v41_v17 }
  0x18   :  { %v31_v20 = vmul.f32 %v60_v10, %v30_v18 }
  0x19   :  { %v43_v22 = vmul.f32 %v62_v11, %v42_v19 }
  0x1a   :  { %v32_v23 = vmul.f32 %v31_v20, %v24_v8 }
  0x1b   :  { %v44_v25 = vmul.f32 %v43_v22, %v25_v9 }
  0x1c   :  { %v34_v26 = vsel %vm33_vm0, %v24_v8, %v32_v23 }
  0x1d   :  { %v37_v27 = vsel %vm35_vm1, %v36_v21, %v34_v26  ;;  %v46_v28 = vsel %vm45_vm2, %v25_v9, %v44_v25 }
  0x1e   :  { %v49_v29 = vsel %vm47_vm3, %v48_v24, %v46_v28 }
  0x1f   :  { %v51_v30 = vadd.f32 %v49_v29, %v37_v27 }
  0x21   :  { %53 = vst [vmem:[%s95_s2] sm:$0xff] %v51_v30 }

</bundles_post_ra>
